<compile_context>
chip_gen: v6e
topology: v6e:2x2x1
jax: 0.10.0
libtpu: 0.0.40
codegen_flags: <defaults>
</compile_context>

<pallas_src>
import jax
import jax.numpy as jnp
from jax.experimental import pallas as pl
from jax.experimental.pallas import tpu as pltpu

_LANE = 128     # vreg lane width
_SUBLANE = 8    # f32 sublane count


def _cdiv(a, b):
    return -(-a // b)


def _round_up(x, m):
    return _cdiv(x, m) * m


# --------------------------------------------------------------------------- #
# Kernels
# --------------------------------------------------------------------------- #
def _residual_linear_kernel(x_ref, w_ref, b_ref, o_ref):
    """o = (x @ w) + b + x for one (tn, D) token tile (weight resident)."""
    x = x_ref[...]
    # MXU operands in w's dtype (bf16 by default), f32 accumulation.
    y = jnp.dot(x.astype(w_ref.dtype), w_ref[...],
                preferred_element_type=jnp.float32)
    # Bias + residual add stay in f32 (VPU adds are free filler under the
    # MXU/DMA schedule), then cast to the output dtype.
    o_ref[...] = (y + b_ref[...] + x.astype(jnp.float32)).astype(o_ref.dtype)


def _residual_linear_coltiled_kernel(x_ref, w_ref, b_ref, xr_ref, o_ref):
    """Column-tiled variant: o[:, j] = (x @ w[:, j]) + b[j] + x[:, j]."""
    y = jnp.dot(x_ref[...].astype(w_ref.dtype), w_ref[...],
                preferred_element_type=jnp.float32)
    o_ref[...] = (y + b_ref[...] + xr_ref[...].astype(jnp.float32)).astype(o_ref.dtype)


# --------------------------------------------------------------------------- #
# Hardware queries (safe fallbacks if unavailable)
# --------------------------------------------------------------------------- #
def _vmem_capacity_bytes():
    try:
        return int(pltpu.get_tpu_info().vmem_capacity_bytes)
    except Exception:
        return 64 * 1024 * 1024          # v7x-safe fallback


def _num_tensorcores():
    try:
        info = pltpu.get_tpu_info()
    except Exception:
        return 1
    for name in ("num_cores", "core_count", "num_tensorcores", "tensor_cores"):
        v = getattr(info, name, None)
        if isinstance(v, int) and v > 0:
            return v
    return 1                              # assume single TC (v5e/v6e) if unknown


# --------------------------------------------------------------------------- #
# Tiling
# --------------------------------------------------------------------------- #
def _pick_token_tile(n_tokens, d, x_item, o_item, resident_w_bytes, budget):
    """Largest token tile (multiple of 8) whose pipelined footprint fits."""
    bias_bytes = 2 * d * 4
    avail = budget - resident_w_bytes - bias_bytes
    per_row = 2 * d * (x_item + o_item)        # x + out tiles, double-buffered
    tn_cap = avail // per_row if avail > 0 else 0
    tn = min(1024, int(tn_cap))
    tn = (tn // _SUBLANE) * _SUBLANE           # sublane-aligned, no 256 rounding
    tn = min(tn, _round_up(n_tokens, _SUBLANE))  # never exceed the array
    return max(tn, 0)


# --------------------------------------------------------------------------- #
# pallas_call wrappers
# --------------------------------------------------------------------------- #
def _resident_weight_call(x2, w_c, b_c, out_dtype, N, D, tn,
                          single_buffer_w, w_bytes, budget):
    grid = _cdiv(N, tn)                    # ragged last block: stores masked

    w_spec_kwargs = {}
    if single_buffer_w:
        # Constant index_map => fetched once; one VMEM buffer is enough.
        w_spec_kwargs = dict(pipeline_mode=pl.Buffered(1))
    w_spec = pl.BlockSpec((D, D), lambda i: (0, 0), **w_spec_kwargs)

    x_item = x2.dtype.itemsize
    o_item = jnp.dtype(out_dtype).itemsize
    w_bufs = 1 if single_buffer_w else 2
    step_bytes = 2 * tn * D * (x_item + o_item) + w_bufs * w_bytes + 2 * D * 4
    vmem_limit = int(min(budget, max(step_bytes * 5 // 4 + (2 << 20), 16 << 20)))
    vmem_limit = max(vmem_limit, step_bytes)

    cost = pl.CostEstimate(
        flops=2 * N * D * D + 2 * N * D,
        transcendentals=0,
        bytes_accessed=N * D * (x_item + o_item) + w_bytes + D * 4,
    )

    return pl.pallas_call(
        _residual_linear_kernel,
        out_shape=jax.ShapeDtypeStruct((N, D), out_dtype),
        grid_spec=pltpu.PrefetchScalarGridSpec(
            num_scalar_prefetch=0,
            grid=(grid,),
            in_specs=[
                pl.BlockSpec((tn, D), lambda i: (i, 0)),   # token tile
                w_spec,                                    # resident weight
                pl.BlockSpec((1, D), lambda i: (0, 0)),    # bias
            ],
            out_specs=pl.BlockSpec((tn, D), lambda i: (i, 0)),
        ),
        compiler_params=pltpu.CompilerParams(
            dimension_semantics=("parallel",),
            vmem_limit_bytes=vmem_limit,
        ),
        cost_estimate=cost,
        # Input/output token tiling is identical (read-before-write per tile),
        # and x is unpadded, so this genuinely reuses x's HBM buffer.
        input_output_aliases={0: 0},
    )(x2, w_c, b_c)


def _column_tiled_call(x2, w_c, b_c, out_dtype, N, D, budget):
    """Fallback for very wide models: weight tiled along output columns."""
    x_item = x2.dtype.itemsize
    o_item = jnp.dtype(out_dtype).itemsize
    w_item = w_c.dtype.itemsize

    tn = min(256, _round_up(N, _SUBLANE))
    fixed = 2 * tn * D * x_item + 2 * D * 4              # full-width x + bias
    per_col = 2 * (D * w_item + tn * (x_item + o_item))  # w col, x_res, out
    tc_cap = (budget - fixed) // per_col if budget > fixed else 0
    tc = (int(tc_cap) // _LANE) * _LANE
    d_lane = (D // _LANE) * _LANE if D >= _LANE else _LANE
    tc = max(_LANE, min(tc, d_lane))

    grid = (_cdiv(N, tn), _cdiv(D, tc))                  # ragged blocks masked

    step_bytes = fixed + tc * per_col
    vmem_limit = int(min(budget, max(step_bytes * 5 // 4 + (2 << 20), 16 << 20)))
    vmem_limit = max(vmem_limit, step_bytes)

    cost = pl.CostEstimate(
        flops=2 * N * D * D + 2 * N * D,
        transcendentals=0,
        bytes_accessed=N * D * (2 * x_item + o_item) + D * D * w_item + D * 4,
    )

    return pl.pallas_call(
        _residual_linear_coltiled_kernel,
        out_shape=jax.ShapeDtypeStruct((N, D), out_dtype),
        grid_spec=pltpu.PrefetchScalarGridSpec(
            num_scalar_prefetch=0,
            grid=grid,
            in_specs=[
                pl.BlockSpec((tn, D), lambda i, j: (i, 0)),   # x full width (matmul)
                pl.BlockSpec((D, tc), lambda i, j: (0, j)),   # weight column tile
                pl.BlockSpec((1, tc), lambda i, j: (0, j)),   # bias column tile
                pl.BlockSpec((tn, tc), lambda i, j: (i, j)),  # x residual slice
            ],
            out_specs=pl.BlockSpec((tn, tc), lambda i, j: (i, j)),
        ),
        compiler_params=pltpu.CompilerParams(
            dimension_semantics=("parallel", "parallel"),
            vmem_limit_bytes=vmem_limit,
        ),
        cost_estimate=cost,
    )(x2, w_c, b_c, x2)


# --------------------------------------------------------------------------- #
# Public wrapper
# --------------------------------------------------------------------------- #
def residual_add_linear(x, w, b, *, mxu_dtype=jnp.bfloat16, tn=None,
                        vmem_budget_bytes=None):
    """out = (x @ w + b) + x fused in one Pallas kernel.

    x: [B, S, D] (float32 or bfloat16); w: [D, D]; b: [D].
    mxu_dtype: explicit precision of the Linear's MXU operands (bf16 by
      default for speed; pass jnp.float32 for full-precision `fn`).
      Accumulation is always f32; the residual add is done in f32.
    """
    B, S, D = x.shape
    N = B * S
    x2 = x.reshape(N, D)                       # metadata reshape, no HBM pass
    out_dtype = x.dtype                        # `x += res` keeps x's dtype

    w_c = w.astype(mxu_dtype)
    b_c = b.reshape(1, D).astype(jnp.float32)

    # Generation-aware VMEM budget (~80% of physical: v5e/v6e 128 MiB -> ~102,
    # v7x 64 MiB/TC -> ~52).
    if vmem_budget_bytes is None:
        vmem_budget_bytes = int(_vmem_capacity_bytes() * 0.8)

    x_item = x2.dtype.itemsize
    o_item = jnp.dtype(out_dtype).itemsize
    w_bytes = D * D * w_c.dtype.itemsize

    # Single-buffer the resident weight once double-buffering it would eat a
    # meaningful slice of the budget (constant index_map => fetched once).
    single_buffer_w = (2 * w_bytes > vmem_budget_bytes // 4)
    w_bufs = 1 if single_buffer_w else 2

    if tn is None:
        tn = _pick_token_tile(N, D, x_item, o_item, w_bufs * w_bytes,
                              vmem_budget_bytes)

    # Shard the token axis across TensorCores only when the chip actually has
    # more than one (v7x); on v5e/v6e a forced split just adds a serial step.
    cores = _num_tensorcores()
    if cores > 1 and tn >= _SUBLANE:
        tn = min(tn, max(_SUBLANE, _round_up(_cdiv(N, cores), _SUBLANE)))

    if tn >= _SUBLANE:
        out2 = _resident_weight_call(x2, w_c, b_c, out_dtype, N, D, tn,
                                     single_buffer_w, w_bytes,
                                     vmem_budget_bytes)
    else:
        # Resident weight leaves no room for a token tile: tile weight columns.
        out2 = _column_tiled_call(x2, w_c, b_c, out_dtype, N, D,
                                  vmem_budget_bytes)
    return out2.reshape(B, S, D)


# --------------------------------------------------------------------------- #
# Self-test
# --------------------------------------------------------------------------- #
if __name__ == "__main__":
    # Toy ViT block: batch=2, seq=8, hidden=32 (misaligned D -> full-dim
    # blocks, no padding anywhere).
    B, S, D = 2, 8, 32
    key = jax.random.PRNGKey(0)
    kx, kw, kb = jax.random.split(key, 3)
    x = jax.random.normal(kx, (B, S, D), dtype=jnp.float32)
    w = jax.random.normal(kw, (D, D), dtype=jnp.float32) * (1.0 / D ** 0.5)
    b = jax.random.normal(kb, (D,), dtype=jnp.float32) * 0.02

    fwd = jax.jit(residual_add_linear)
    out = fwd(x, w, b)
    jax.block_until_ready(out)
    assert out.shape == x.shape and out.dtype == x.dtype

    # Reference with matching precision (bf16 MXU operands, f32 accumulation).
    ref_bf16 = jnp.einsum(
        "bsd,de->bse", x.astype(jnp.bfloat16), w.astype(jnp.bfloat16),
        preferred_element_type=jnp.float32) + b + x
    assert jnp.allclose(out, ref_bf16, atol=1e-3, rtol=1e-3), "mismatch vs bf16 ref"

    # Loose sanity check against full-f32 math (bf16 operand rounding only).
    ref_f32 = jnp.einsum("bsd,de->bse", x, w) + b + x
    assert jnp.allclose(out, ref_f32, atol=5e-2, rtol=5e-2), "mismatch vs f32 ref"

    # Lane-aligned hidden + ragged token count: exercises the masked ragged
    # last block (no wrapper-side pad/slice HBM passes).
    B2, S2, D2 = 2, 7, 128
    kx2, kw2, kb2 = jax.random.split(jax.random.PRNGKey(1), 3)
    x_b = jax.random.normal(kx2, (B2, S2, D2), dtype=jnp.float32)
    w_b = jax.random.normal(kw2, (D2, D2), dtype=jnp.float32) * (1.0 / D2 ** 0.5)
    b_b = jax.random.normal(kb2, (D2,), dtype=jnp.float32) * 0.02
    out_b = jax.jit(residual_add_linear)(x_b, w_b, b_b)
    jax.block_until_ready(out_b)
    ref_b = jnp.einsum(
        "bsd,de->bse", x_b.astype(jnp.bfloat16), w_b.astype(jnp.bfloat16),
        preferred_element_type=jnp.float32) + b_b + x_b
    assert out_b.shape == x_b.shape
    assert jnp.allclose(out_b, ref_b, atol=1e-3, rtol=1e-3), "ragged-N mismatch"

    print("KERNEL_OK")
</pallas_src>

<mosaic_0001>
module attributes {stable_mosaic.version = 11 : i64} {
  func.func @_residual_linear_kernel(%arg0: i32, %arg1: memref<16x32xf32, #tpu.memory_space<vmem>>, %arg2: memref<32x32xbf16, #tpu.memory_space<vmem>>, %arg3: memref<1x32xf32, #tpu.memory_space<vmem>>, %arg4: memref<16x32xf32, #tpu.memory_space<vmem>>) attributes {dimension_semantics = [#tpu.dimension_semantics<parallel>], iteration_bounds = array<i64: 1>, scalar_prefetch = 0 : i64, scratch_operands = 0 : i64, tpu.core_type = #tpu.core_type<tc>, window_params = [{transform_indices = @transform_0, window_bounds = array<i64: 16, 32>}, {pipeline_mode = #tpu.pipeline_mode<synchronous>, transform_indices = @transform_1, window_bounds = array<i64: 32, 32>}, {pipeline_mode = #tpu.pipeline_mode<synchronous>, transform_indices = @transform_2, window_bounds = array<i64: 1, 32>}, {transform_indices = @transform_3, window_bounds = array<i64: 16, 32>}]} {
    %c0 = arith.constant 0 : index
    %c0_0 = arith.constant 0 : index
    %0 = vector.load %arg1[%c0, %c0_0] : memref<16x32xf32, #tpu.memory_space<vmem>>, vector<16x32xf32>
    %1 = arith.truncf %0 : vector<16x32xf32> to vector<16x32xbf16>
    %c0_1 = arith.constant 0 : index
    %c0_2 = arith.constant 0 : index
    %2 = vector.load %arg2[%c0_1, %c0_2] : memref<32x32xbf16, #tpu.memory_space<vmem>>, vector<32x32xbf16>
    %cst = arith.constant dense<0.000000e+00> : vector<16x32xf32>
    %3 = tpu.matmul %1, %2, %cst {dimension_numbers = #tpu.dot_dimension_numbers<[1], [0], [0], [1], [0, 0, 1, 1], [], []>} : vector<16x32xbf16>, vector<32x32xbf16>, vector<16x32xf32> -> vector<16x32xf32>
    %c0_3 = arith.constant 0 : index
    %c0_4 = arith.constant 0 : index
    %4 = vector.load %arg3[%c0_3, %c0_4] : memref<1x32xf32, #tpu.memory_space<vmem>>, vector<1x32xf32>
    %5 = vector.broadcast %4 : vector<1x32xf32> to vector<16x32xf32>
    %6 = arith.addf %3, %5 : vector<16x32xf32>
    %7 = arith.addf %6, %0 : vector<16x32xf32>
    %c0_5 = arith.constant 0 : index
    %c0_6 = arith.constant 0 : index
    %8 = vector.load %arg4[%c0_5, %c0_6] : memref<16x32xf32, #tpu.memory_space<vmem>>, vector<16x32xf32>
    tpu.vector_store %arg4[%c0_5, %c0_6], %7 {strides = array<i32>} : memref<16x32xf32, #tpu.memory_space<vmem>>, vector<16x32xf32>,
    return
  }
  func.func @transform_0(%arg0: i32) -> (i32, i32) {
    %c0_i32 = arith.constant 0 : i32
    %c0_i32_0 = arith.constant 0 : i32
    return %arg0, %c0_i32 : i32, i32
  }
  func.func @transform_1(%arg0: i32) -> (i32, i32) {
    %c0_i32 = arith.constant 0 : i32
    %c0_i32_0 = arith.constant 0 : i32
    %c0_i32_1 = arith.constant 0 : i32
    return %c0_i32, %c0_i32_0 : i32, i32
  }
  func.func @transform_2(%arg0: i32) -> (i32, i32) {
    %c0_i32 = arith.constant 0 : i32
    %c0_i32_0 = arith.constant 0 : i32
    %c0_i32_1 = arith.constant 0 : i32
    return %c0_i32, %c0_i32_0 : i32, i32
  }
  func.func @transform_3(%arg0: i32) -> (i32, i32) {
    %c0_i32 = arith.constant 0 : i32
    %c0_i32_0 = arith.constant 0 : i32
    return %arg0, %c0_i32 : i32, i32
  }
}

</mosaic_0001>

<bundles_post_ra>
// kernel: residual_add_linear.1
= control target key start
LH: loop header
LB: loop body
LE: loop exit
PB: predicated region body
PF: predicated region fallthrough
CT: control target
= control target key end

     0   :  { %v113_v0 = vmov 0.0   ;;  %vm114_vm0 = vmmov 0   ;;  %vm41_vm1 = vcmask 261120   ;;  %s156_s1 = inlined_call_operand.vmem [shape: bf16[32,32], index: 1, kind: input, shape index: {}]   ;;  %s157_s0 = inlined_call_operand.vmem [shape: f32[16,32], index: 0, kind: input, shape index: {}, may-alias: {0,3}]   ;;  %s158_s2 = inlined_call_operand.vmem [shape: f32[1,32], index: 2, kind: input, shape index: {}]   ;;  %s159_s3 = inlined_call_operand.vmem [shape: f32[16,32], index: 3, kind: output, shape index: {}, may-alias: {0,3}]  }
   0x1   :  { %101 = vmatprep.subr.bf16.mxu0 %v113_v0  ;;  %v111_v1 = vld [vmem:[%s156_s1 + $0x8] sm:$0xff]   ;;  %105 = vmatprep.mubr.msk.bf16.mxu0 %vm114_vm0, %v113_v0  ;;  %v112_v2 = vld [vmem:[%s156_s1] sm:$0xff]  }
   0x2   :  { %102 = vmatpush3.bf16.msra.mxu0 %v111_v1  ;;  %v15_v3 = vld [vmem:[%s157_s0] sm:$0xff]  ;;  %v16_v4 = vld [vmem:[%s157_s0 + $0x8] sm:$0xff] }
   0x3   :  { %103 = vmatprep.subr.bf16.mxu0 %v113_v0  ;;  %v17_v5 = vpack.c.bf16 %v16_v4, %v15_v3  ;;  %v94_v6 = vld [vmem:[%s158_s2] ss:$0 sm:$0xff] }
   0x6   :  { %104 = vmatpush3.bf16.msra.mxu0 %v112_v2 }
   0x9   :  { %106 = vmatmul.mubr.msk.bf16.vlgmr.msra.gmra.mxu0 %vm41_vm1, %v17_v5 }
  0xc9   :  { %v79_v7 = vpop.f32.mrf.mxu0 }
  0xca   :  { %v80_v8 = vadd.f32 %v94_v6, %v79_v7 }
  0xcb   :  { %v107_v9 = vpop.f32.mrf.mxu0 }
  0xcc   :  { %v86_v10 = vadd.f32 %v80_v8, %v15_v3 }
  0xcd   :  { %v82_v11 = vpop.f32.mrf.mxu0 }
  0xce   :  { %88 = vst.msk [vmem:[%s159_s3] sm:$0xff] %vm41_vm1, %v86_v10  ;;  %v83_v12 = vadd.f32 %v94_v6, %v82_v11 }
  0xcf   :  { %v108_v13 = vpop.f32.mrf.mxu0 }
  0xd0   :  { %v87_v14 = vadd.f32 %v83_v12, %v16_v4 }
  0xd2   :  { %89 = vst.msk [vmem:[%s159_s3 + $0x8] sm:$0xff] %vm41_vm1, %v87_v14 }

</bundles_post_ra>
